<compile_context>
chip_gen: v7x
topology: tpu7x:2x2x1
jax: 0.10.0
libtpu: 0.0.40
codegen_flags: <defaults>
</compile_context>

<pallas_src>
import math

import jax
import jax.numpy as jnp
from jax.experimental import pallas as pl
from jax.experimental.pallas import tpu as pltpu


# ----------------------------------------------------------------------------
# Kernels
# ----------------------------------------------------------------------------
def _noisy_linear_train_kernel(x_ref, wmu_ref, wsig_ref, ein_ref, eout_ref,
                               bias_ref, o_ref, acc_mu_ref, acc_sig_ref):
    """Grid = (N tiles, K tiles); K (reduction) is the last axis."""
    k = pl.program_id(1)

    @pl.when(k == 0)
    def _():
        acc_mu_ref[...] = jnp.zeros_like(acc_mu_ref)
        acc_sig_ref[...] = jnp.zeros_like(acc_sig_ref)

    x = x_ref[...]                                   # (B, tk)
    # mu path: plain matmul on the MXU.
    acc_mu_ref[...] += jnp.dot(x, wmu_ref[...],
                               preferred_element_type=jnp.float32)
    # sigma path: scale the *activations* by eps_in (row broadcast, B*tk VPU
    # ops) instead of rebuilding the (tk, tn) noisy-weight tile.
    acc_sig_ref[...] += jnp.dot(x * ein_ref[...], wsig_ref[...],
                                preferred_element_type=jnp.float32)

    @pl.when(k == pl.num_programs(1) - 1)
    def _():
        # y = acc_mu + eps_out * acc_sig + (bias_mu + bias_sigma * eps_out)
        o_ref[...] = (acc_mu_ref[...]
                      + eout_ref[...] * acc_sig_ref[...]
                      + bias_ref[...]).astype(o_ref.dtype)


def _noisy_linear_eval_kernel(x_ref, wmu_ref, bias_ref, o_ref, acc_ref):
    k = pl.program_id(1)

    @pl.when(k == 0)
    def _():
        acc_ref[...] = jnp.zeros_like(acc_ref)

    acc_ref[...] += jnp.dot(x_ref[...], wmu_ref[...],
                            preferred_element_type=jnp.float32)

    @pl.when(k == pl.num_programs(1) - 1)
    def _():
        o_ref[...] = (acc_ref[...] + bias_ref[...]).astype(o_ref.dtype)


# ----------------------------------------------------------------------------
# Tile selection
# ----------------------------------------------------------------------------
def _pick_tile(dim, pref, align=128):
    """Largest tile <= pref that divides `dim` and is a multiple of `align`.

    Falls back to the full dim (always a legal BlockSpec shape) when no
    aligned divisor exists.  `align=128` keeps weight tiles (8,128)-legal and
    output tiles lane-dense.
    """
    pref = min(pref, dim)
    if dim % align == 0:
        t = (pref // align) * align
        while t >= align:
            if dim % t == 0:
                return t
            t -= align
    return dim


def _vmem_bytes_estimate(B, tn, tk, n_weight_streams):
    """Rough per-pipeline-stage VMEM usage (f32, double-buffered inputs)."""
    f32 = 4
    weights = n_weight_streams * 2 * tk * tn * f32      # double-buffered tiles
    x_tile = 2 * B * tk * f32
    rows = 2 * (tk + 2 * tn) * f32                       # eps_in / eps_out / bias
    out_tile = 2 * B * tn * f32
    acc = 2 * B * tn * f32                                # f32 accumulators
    return weights + x_tile + rows + out_tile + acc


def _fit_tiles(B, in_f, out_f, tn, tk, n_weight_streams, budget):
    """Shrink (tn, tk) until the VMEM estimate fits the budget."""
    tn = _pick_tile(out_f, tn)
    tk = _pick_tile(in_f, tk)
    while _vmem_bytes_estimate(B, tn, tk, n_weight_streams) > budget:
        progressed = False
        if tk >= tn and tk > 128:
            cand = _pick_tile(in_f, tk // 2)
            if cand < tk:
                tk, progressed = cand, True
        if not progressed and tn > 128:
            cand = _pick_tile(out_f, tn // 2)
            if cand < tn:
                tn, progressed = cand, True
        if not progressed and tk > 128:
            cand = _pick_tile(in_f, tk // 2)
            if cand < tk:
                tk, progressed = cand, True
        if not progressed:
            break   # cannot shrink further (e.g. odd dims); let it ride
    return tn, tk


# ----------------------------------------------------------------------------
# Wrapper
# ----------------------------------------------------------------------------
def noisy_linear(x, weight_mu_t, weight_sigma_t, eps_in, eps_out,
                 bias_mu, bias_sigma, *, training=True,
                 tn=512, tk=1024,
                 vmem_budget_bytes=48 * 1024 * 1024,
                 core_parallel=False):
    """x: [B, in_f]; weight_*_t: [in_f, out_f] (transposed storage);
    eps_in: [in_f]; eps_out / bias_*: [out_f].  Returns [B, out_f].

    vmem_budget_bytes: 48 MiB default is safe on v7x (64 MiB physical VMEM);
    on v5e/v6e (128 MiB) pass ~96 MiB and tn=1024 / tk=2048 for larger tiles.
    core_parallel: use pltpu.CORE_PARALLEL on the N axis (v7x 2-TC sharding).
    """
    B, in_f = x.shape
    in_f_w, out_f = weight_mu_t.shape
    assert in_f == in_f_w, "weight must be stored transposed: [in_f, out_f]"

    n_weight_streams = 2 if training else 1
    tn, tk = _fit_tiles(B, in_f, out_f, tn, tk, n_weight_streams,
                        vmem_budget_bytes)
    grid = (out_f // tn, in_f // tk)          # N parallel, K (reduction) last
    n_tiles, k_tiles = grid

    x_spec = pl.BlockSpec((B, tk), lambda n, k: (0, k))
    w_spec = pl.BlockSpec((tk, tn), lambda n, k: (k, n))
    ein_spec = pl.BlockSpec((1, tk), lambda n, k: (0, k))     # lane-dense row
    row_spec = pl.BlockSpec((1, tn), lambda n, k: (0, n))
    o_spec = pl.BlockSpec((B, tn), lambda n, k: (0, n))

    out_shape = jax.ShapeDtypeStruct((B, out_f), x.dtype)
    n_sem = pltpu.CORE_PARALLEL if core_parallel else pltpu.PARALLEL
    cparams = pltpu.CompilerParams(
        dimension_semantics=(n_sem, pltpu.ARBITRARY),
        vmem_limit_bytes=int(vmem_budget_bytes))

    if training:
        # Precompute the noisy bias in the wrapper (O(out_f), fused by XLA);
        # the kernel only needs one bias row + the eps_out row for scaling.
        noisy_bias = (bias_mu + bias_sigma * eps_out).reshape(1, out_f)
        cost = pl.CostEstimate(
            flops=4 * B * in_f * out_f + B * in_f + 3 * B * out_f,
            transcendentals=0,
            bytes_accessed=4 * (2 * in_f * out_f            # wmu + wsig
                                + n_tiles * B * in_f        # x re-fetch per N tile
                                + n_tiles * in_f            # eps_in re-fetch
                                + 2 * out_f                 # eps_out + bias rows
                                + B * out_f))               # output
        # NOTE: for a further ~2x on HBM bytes, store weight_mu_t/weight_sigma_t
        # in bf16 (the f32 accumulation below already handles mixed inputs).
        return pl.pallas_call(
            _noisy_linear_train_kernel,
            out_shape=out_shape,
            grid_spec=pltpu.PrefetchScalarGridSpec(
                num_scalar_prefetch=0,
                grid=grid,
                in_specs=[x_spec, w_spec, w_spec, ein_spec, row_spec, row_spec],
                out_specs=o_spec,
                scratch_shapes=[pltpu.VMEM((B, tn), jnp.float32),
                                pltpu.VMEM((B, tn), jnp.float32)]),
            compiler_params=cparams,
            cost_estimate=cost,
        )(x, weight_mu_t, weight_sigma_t,
          eps_in.reshape(1, in_f), eps_out.reshape(1, out_f), noisy_bias)

    # Eval mode: only mu weight/bias are read -- sigma / epsilon never DMA'd.
    cost = pl.CostEstimate(
        flops=2 * B * in_f * out_f + B * out_f,
        transcendentals=0,
        bytes_accessed=4 * (in_f * out_f + n_tiles * B * in_f
                            + out_f + B * out_f))
    return pl.pallas_call(
        _noisy_linear_eval_kernel,
        out_shape=out_shape,
        grid_spec=pltpu.PrefetchScalarGridSpec(
            num_scalar_prefetch=0,
            grid=grid,
            in_specs=[x_spec, w_spec, row_spec],
            out_specs=o_spec,
            scratch_shapes=[pltpu.VMEM((B, tn), jnp.float32)]),
        compiler_params=cparams,
        cost_estimate=cost,
    )(x, weight_mu_t, bias_mu.reshape(1, out_f))


# ----------------------------------------------------------------------------
# Parameter / noise initialization (reset_parameters + reset_noise)
# ----------------------------------------------------------------------------
def init_noisy_linear_params(key, in_features, out_features, std_init=0.5):
    """PyTorch reset_parameters() + reset_noise(), with weights stored
    transposed ([in_f, out_f]) and the noise kept factorized (eps_in, eps_out);
    weight_epsilon = outer(eps_out, eps_in) is never materialized."""
    k1, k2, k3, k4 = jax.random.split(key, 4)
    mu_range = 1.0 / math.sqrt(in_features)

    weight_mu_t = jax.random.uniform(
        k1, (in_features, out_features), jnp.float32, -mu_range, mu_range)
    weight_sigma_t = jnp.full((in_features, out_features),
                              std_init / math.sqrt(in_features), jnp.float32)
    bias_mu = jax.random.uniform(
        k2, (out_features,), jnp.float32, -mu_range, mu_range)
    bias_sigma = jnp.full((out_features,),
                          std_init / math.sqrt(out_features), jnp.float32)

    # reset_noise(): eps = sign(randn_a) * sqrt(|randn_b|) (two independent
    # draws, matching the PyTorch code).
    ki1, ki2 = jax.random.split(k3)
    ko1, ko2 = jax.random.split(k4)
    eps_in = (jnp.sign(jax.random.normal(ki1, (in_features,))) *
              jnp.sqrt(jnp.abs(jax.random.normal(ki2, (in_features,)))))
    eps_out = (jnp.sign(jax.random.normal(ko1, (out_features,))) *
               jnp.sqrt(jnp.abs(jax.random.normal(ko2, (out_features,)))))

    return dict(weight_mu_t=weight_mu_t, weight_sigma_t=weight_sigma_t,
                eps_in=eps_in, eps_out=eps_out,
                bias_mu=bias_mu, bias_sigma=bias_sigma)


if __name__ == "__main__":
    key = jax.random.PRNGKey(0)
    kx, kp = jax.random.split(key)

    batch, in_features, out_features = 8, 256, 512
    x = jax.random.normal(kx, (batch, in_features), jnp.float32)
    p = init_noisy_linear_params(kp, in_features, out_features, std_init=0.5)

    # Small tiles so the demo exercises a real (N, K) grid, the split f32
    # accumulators and the pl.when init/finalize path.
    y = noisy_linear(x, p["weight_mu_t"], p["weight_sigma_t"],
                     p["eps_in"], p["eps_out"], p["bias_mu"], p["bias_sigma"],
                     training=True, tn=128, tk=128)
    y = jax.block_until_ready(y)

    # Pure-JAX reference (PyTorch: weight = mu + sigma * outer(eps_out, eps_in),
    # y = x @ weight.T + bias; with transposed storage that is x @ w_t + b).
    w_t = (p["weight_mu_t"] +
           p["weight_sigma_t"] * (p["eps_in"][:, None] * p["eps_out"][None, :]))
    b = p["bias_mu"] + p["bias_sigma"] * p["eps_out"]
    y_ref = x @ w_t + b
    assert y.shape == (batch, out_features)
    assert jnp.allclose(y, y_ref, atol=1e-4, rtol=1e-4), "train-mode mismatch"

    # Default (large-tile) config: K axis collapses (tk == in_f), x resident.
    y_big = jax.block_until_ready(
        noisy_linear(x, p["weight_mu_t"], p["weight_sigma_t"],
                     p["eps_in"], p["eps_out"], p["bias_mu"], p["bias_sigma"],
                     training=True))
    assert jnp.allclose(y_big, y_ref, atol=1e-4, rtol=1e-4), "big-tile mismatch"

    # Eval-mode path (only mu params are streamed).
    y_eval = jax.block_until_ready(
        noisy_linear(x, p["weight_mu_t"], p["weight_sigma_t"],
                     p["eps_in"], p["eps_out"], p["bias_mu"], p["bias_sigma"],
                     training=False, tn=128, tk=128))
    y_eval_ref = x @ p["weight_mu_t"] + p["bias_mu"]
    assert jnp.allclose(y_eval, y_eval_ref, atol=1e-4, rtol=1e-4), "eval mismatch"

    print("KERNEL_OK")
</pallas_src>

<mosaic_0001>
module attributes {stable_mosaic.version = 11 : i64} {
  func.func @_noisy_linear_train_kernel(%arg0: i32, %arg1: i32, %arg2: memref<8x128xf32, #tpu.memory_space<vmem>>, %arg3: memref<128x128xf32, #tpu.memory_space<vmem>>, %arg4: memref<128x128xf32, #tpu.memory_space<vmem>>, %arg5: memref<1x128xf32, #tpu.memory_space<vmem>>, %arg6: memref<1x128xf32, #tpu.memory_space<vmem>>, %arg7: memref<1x128xf32, #tpu.memory_space<vmem>>, %arg8: memref<8x128xf32, #tpu.memory_space<vmem>>, %arg9: memref<8x128xf32, #tpu.memory_space<vmem>>, %arg10: memref<8x128xf32, #tpu.memory_space<vmem>>) attributes {dimension_semantics = [#tpu.dimension_semantics<parallel>, #tpu.dimension_semantics<arbitrary>], iteration_bounds = array<i64: 4, 2>, scalar_prefetch = 0 : i64, scratch_operands = 2 : i64, tpu.core_type = #tpu.core_type<tc>, window_params = [{transform_indices = @transform_0, window_bounds = array<i64: 8, 128>}, {transform_indices = @transform_1, window_bounds = array<i64: 128, 128>}, {transform_indices = @transform_2, window_bounds = array<i64: 128, 128>}, {transform_indices = @transform_3, window_bounds = array<i64: 1, 128>}, {transform_indices = @transform_4, window_bounds = array<i64: 1, 128>}, {transform_indices = @transform_5, window_bounds = array<i64: 1, 128>}, {transform_indices = @transform_6, window_bounds = array<i64: 8, 128>}]} {
    %c0_i32 = arith.constant 0 : i32
    %0 = arith.cmpi eq, %arg1, %c0_i32 : i32
    %1 = arith.extui %0 : i1 to i32
    %c0_i32_0 = arith.constant 0 : i32
    %2 = arith.cmpi ne, %1, %c0_i32_0 : i32
    scf.if %2 {
      %cst_18 = arith.constant 0.000000e+00 : f32
      %20 = vector.broadcast %cst_18 : f32 to vector<8x128xf32>
      %c0_19 = arith.constant 0 : index
      %c0_20 = arith.constant 0 : index
      %21 = vector.load %arg9[%c0_19, %c0_20] : memref<8x128xf32, #tpu.memory_space<vmem>>, vector<8x128xf32>
      tpu.vector_store %arg9[%c0_19, %c0_20], %20 {strides = array<i32>} : memref<8x128xf32, #tpu.memory_space<vmem>>, vector<8x128xf32>,
      %cst_21 = arith.constant 0.000000e+00 : f32
      %22 = vector.broadcast %cst_21 : f32 to vector<8x128xf32>
      %c0_22 = arith.constant 0 : index
      %c0_23 = arith.constant 0 : index
      %23 = vector.load %arg10[%c0_22, %c0_23] : memref<8x128xf32, #tpu.memory_space<vmem>>, vector<8x128xf32>
      tpu.vector_store %arg10[%c0_22, %c0_23], %22 {strides = array<i32>} : memref<8x128xf32, #tpu.memory_space<vmem>>, vector<8x128xf32>,
    } else {
    }
    %c0 = arith.constant 0 : index
    %c0_1 = arith.constant 0 : index
    %3 = vector.load %arg2[%c0, %c0_1] : memref<8x128xf32, #tpu.memory_space<vmem>>, vector<8x128xf32>
    %c0_2 = arith.constant 0 : index
    %c0_3 = arith.constant 0 : index
    %4 = vector.load %arg9[%c0_2, %c0_3] : memref<8x128xf32, #tpu.memory_space<vmem>>, vector<8x128xf32>
    %c0_4 = arith.constant 0 : index
    %c0_5 = arith.constant 0 : index
    %5 = vector.load %arg3[%c0_4, %c0_5] : memref<128x128xf32, #tpu.memory_space<vmem>>, vector<128x128xf32>
    %cst = arith.constant dense<0.000000e+00> : vector<8x128xf32>
    %6 = tpu.matmul %3, %5, %cst {dimension_numbers = #tpu.dot_dimension_numbers<[1], [0], [0], [1], [0, 0, 1, 1], [], []>} : vector<8x128xf32>, vector<128x128xf32>, vector<8x128xf32> -> vector<8x128xf32>
    %7 = arith.addf %4, %6 : vector<8x128xf32>
    %c0_6 = arith.constant 0 : index
    %c0_7 = arith.constant 0 : index
    %8 = vector.load %arg9[%c0_6, %c0_7] : memref<8x128xf32, #tpu.memory_space<vmem>>, vector<8x128xf32>
    tpu.vector_store %arg9[%c0_6, %c0_7], %7 {strides = array<i32>} : memref<8x128xf32, #tpu.memory_space<vmem>>, vector<8x128xf32>,
    %c0_8 = arith.constant 0 : index
    %c0_9 = arith.constant 0 : index
    %9 = vector.load %arg10[%c0_8, %c0_9] : memref<8x128xf32, #tpu.memory_space<vmem>>, vector<8x128xf32>
    %c0_10 = arith.constant 0 : index
    %c0_11 = arith.constant 0 : index
    %10 = vector.load %arg5[%c0_10, %c0_11] : memref<1x128xf32, #tpu.memory_space<vmem>>, vector<1x128xf32>
    %11 = vector.broadcast %10 : vector<1x128xf32> to vector<8x128xf32>
    %12 = arith.mulf %3, %11 : vector<8x128xf32>
    %c0_12 = arith.constant 0 : index
    %c0_13 = arith.constant 0 : index
    %13 = vector.load %arg4[%c0_12, %c0_13] : memref<128x128xf32, #tpu.memory_space<vmem>>, vector<128x128xf32>
    %cst_14 = arith.constant dense<0.000000e+00> : vector<8x128xf32>
    %14 = tpu.matmul %12, %13, %cst_14 {dimension_numbers = #tpu.dot_dimension_numbers<[1], [0], [0], [1], [0, 0, 1, 1], [], []>} : vector<8x128xf32>, vector<128x128xf32>, vector<8x128xf32> -> vector<8x128xf32>
    %15 = arith.addf %9, %14 : vector<8x128xf32>
    %c0_15 = arith.constant 0 : index
    %c0_16 = arith.constant 0 : index
    %16 = vector.load %arg10[%c0_15, %c0_16] : memref<8x128xf32, #tpu.memory_space<vmem>>, vector<8x128xf32>
    tpu.vector_store %arg10[%c0_15, %c0_16], %15 {strides = array<i32>} : memref<8x128xf32, #tpu.memory_space<vmem>>, vector<8x128xf32>,
    %c1_i32 = arith.constant 1 : i32
    %17 = arith.cmpi eq, %arg1, %c1_i32 : i32
    %18 = arith.extui %17 : i1 to i32
    %c0_i32_17 = arith.constant 0 : i32
    %19 = arith.cmpi ne, %18, %c0_i32_17 : i32
    scf.if %19 {
      %c0_18 = arith.constant 0 : index
      %c0_19 = arith.constant 0 : index
      %20 = vector.load %arg9[%c0_18, %c0_19] : memref<8x128xf32, #tpu.memory_space<vmem>>, vector<8x128xf32>
      %c0_20 = arith.constant 0 : index
      %c0_21 = arith.constant 0 : index
      %21 = vector.load %arg6[%c0_20, %c0_21] : memref<1x128xf32, #tpu.memory_space<vmem>>, vector<1x128xf32>
      %c0_22 = arith.constant 0 : index
      %c0_23 = arith.constant 0 : index
      %22 = vector.load %arg10[%c0_22, %c0_23] : memref<8x128xf32, #tpu.memory_space<vmem>>, vector<8x128xf32>
      %23 = vector.broadcast %21 : vector<1x128xf32> to vector<8x128xf32>
      %24 = arith.mulf %23, %22 : vector<8x128xf32>
      %25 = arith.addf %20, %24 : vector<8x128xf32>
      %c0_24 = arith.constant 0 : index
      %c0_25 = arith.constant 0 : index
      %26 = vector.load %arg7[%c0_24, %c0_25] : memref<1x128xf32, #tpu.memory_space<vmem>>, vector<1x128xf32>
      %27 = vector.broadcast %26 : vector<1x128xf32> to vector<8x128xf32>
      %28 = arith.addf %25, %27 : vector<8x128xf32>
      %c0_26 = arith.constant 0 : index
      %c0_27 = arith.constant 0 : index
      %29 = vector.load %arg8[%c0_26, %c0_27] : memref<8x128xf32, #tpu.memory_space<vmem>>, vector<8x128xf32>
      tpu.vector_store %arg8[%c0_26, %c0_27], %28 {strides = array<i32>} : memref<8x128xf32, #tpu.memory_space<vmem>>, vector<8x128xf32>,
    } else {
    }
    return
  }
  func.func @transform_0(%arg0: i32, %arg1: i32) -> (i32, i32) {
    %c0_i32 = arith.constant 0 : i32
    %c0_i32_0 = arith.constant 0 : i32
    return %c0_i32, %arg1 : i32, i32
  }
  func.func @transform_1(%arg0: i32, %arg1: i32) -> (i32, i32) {
    %c0_i32 = arith.constant 0 : i32
    return %arg1, %arg0 : i32, i32
  }
  func.func @transform_2(%arg0: i32, %arg1: i32) -> (i32, i32) {
    %c0_i32 = arith.constant 0 : i32
    return %arg1, %arg0 : i32, i32
  }
  func.func @transform_3(%arg0: i32, %arg1: i32) -> (i32, i32) {
    %c0_i32 = arith.constant 0 : i32
    %c0_i32_0 = arith.constant 0 : i32
    return %c0_i32, %arg1 : i32, i32
  }
  func.func @transform_4(%arg0: i32, %arg1: i32) -> (i32, i32) {
    %c0_i32 = arith.constant 0 : i32
    %c0_i32_0 = arith.constant 0 : i32
    return %c0_i32, %arg0 : i32, i32
  }
  func.func @transform_5(%arg0: i32, %arg1: i32) -> (i32, i32) {
    %c0_i32 = arith.constant 0 : i32
    %c0_i32_0 = arith.constant 0 : i32
    return %c0_i32, %arg0 : i32, i32
  }
  func.func @transform_6(%arg0: i32, %arg1: i32) -> (i32, i32) {
    %c0_i32 = arith.constant 0 : i32
    %c0_i32_0 = arith.constant 0 : i32
    return %c0_i32, %arg0 : i32, i32
  }
}

</mosaic_0001>

<bundles_post_ra>
// kernel: tpu_custom_call.1
= control target key start
LH: loop header
LB: loop body
LE: loop exit
PB: predicated region body
PF: predicated region fallthrough
CT: control target
= control target key end

     0   :  { %s1900_s0 = inlined_call_operand.hbm [shape: f32[8,256], index: 0, kind: input, shape index: {}]   ;;  %s1901_s1 = inlined_call_operand.hbm [shape: f32[256,512], index: 1, kind: input, shape index: {}]   ;;  %s1902_s2 = inlined_call_operand.hbm [shape: f32[256,512], index: 2, kind: input, shape index: {}]   ;;  %s1903_s3 = inlined_call_operand.vmem [shape: f32[1,256], index: 3, kind: input, shape index: {}]   ;;  %s1904_s4 = inlined_call_operand.vmem [shape: f32[1,512], index: 4, kind: input, shape index: {}]   ;;  %s1905_s5 = inlined_call_operand.vmem [shape: f32[1,512], index: 5, kind: input, shape index: {}]   ;;  %s1906_s6 = inlined_call_operand.hbm [shape: f32[8,512], index: 6, kind: output, shape index: {}]  }
   0x1   :  { %1930 = sst [smem:[#allocation24_spill]] %s1900_s0 }
   0x2   :  { %1931 = sst [smem:[#allocation25_spill]] %s1901_s1 }
   0x3   :  { %1932 = sst [smem:[#allocation26_spill]] %s1902_s2 }
   0x4   :  { %1933 = sst [smem:[#allocation27_spill]] %s1903_s3 }
   0x5   :  { %1934 = sst [smem:[#allocation28_spill]] %s1904_s4 }
   0x6   :  { %1935 = sst [smem:[#allocation29_spill]] %s1905_s5 }
   0x7   :  { %1936 = sst [smem:[#allocation30_spill]] %s1906_s6 }
   0x8   :  { %11 = vsyncpa [#allocation5], 0 }
   0x9   :  { %13 = vsyncpa [#allocation5 + $0x1], 0 }
   0xa   :  { %14 = vsyncpa [#allocation8], 0 }
   0xb   :  { %16 = vsyncpa [#allocation8 + $0x1], 0 }
   0xc   :  { %17 = vsyncpa [#allocation6], 0 }
   0xd   :  { %19 = vsyncpa [#allocation6 + $0x1], 0  ;;  %s1407_s21 = smov 0   ;;  %s1409_s22 = smov 0  }
   0xe   :  { %s1411_s23 = smov 0   ;;  %s1413_s24 = smov 0  }
   0xf   :  { %s1415_s25 = smov 0   ;;  %s1417_s26 = smov 0  }
  0x10   :  { %s1419_s27 = smov 0   ;;  %s1421_s28 = smov 0  }
  0x11   :  { %s1423_s29 = smov 0   ;;  %s1425_s30 = smov 0  }
  0x12   :  { %s1427_s7 = smov 0   ;;  %s1429_s8 = smov 0  }
  0x13   :  { %s1431_s9 = smov 0   ;;  %s1433_s10 = smov 0  }
  0x14 LB: > { %1937 = sst [smem:[#allocation14_spill]] %s1335_s28  ;;  %s1907_s11 = sadd.s32 1, %s1351_s8  ;;  %s1359_s10 = sphi %s1433_s10, %s25_s10   ;;  %s1355_s9 = sphi %s1431_s9, %s1995_s9   ;;  %s1351_s8 = sphi %s1429_s8, %s1994_s8   ;;  %s1347_s7 = sphi %s1427_s7, %s1993_s7   ;;  %s1343_s30 = sphi %s1425_s30, %s1992_s30   ;;  %s1339_s29 = sphi %s1423_s29, %s1991_s29   ;;  %s1335_s28 = sphi %s1421_s28, %s1990_s28   ;;  %s1331_s27 = sphi %s1419_s27, %s1989_s27   ;;  %s1327_s26 = sphi %s1417_s26, %s2001_s26   ;;  %s1323_s25 = sphi %s1415_s25, %s2000_s25   ;;  %s1319_s24 = sphi %s1413_s24, %s1999_s24   ;;  %s1315_s23 = sphi %s1411_s23, %s1998_s23   ;;  %s1311_s22 = sphi %s1409_s22, %s1997_s22   ;;  %s1307_s21 = sphi %s1407_s21, %s1996_s21  }
  0x15   : > { %1938 = sst [smem:[#allocation15_spill]] %s1339_s29  ;;  %s37_s12 = sadd.s32 1, %s1355_s9 }
  0x16   : > { %1939 = sst [smem:[#allocation16_spill]] %s1343_s30  ;;  %p1481_p0 = scmp.ge.s32.totalorder %s1907_s11, 2 }
  0x17   : > { %1940 = sst [smem:[#allocation17_spill]] %s1347_s7  ;;  %p1912_p1 = scmp.eq.s32.totalorder %s1359_s10, 0 }
  0x18   : > { %1941 = sst [smem:[#allocation18_spill]] %s1351_s8  ;;  %p79_p2 = scmp.ne.s32.totalorder %s1327_s26, %s1323_s25 }
  0x19   : > { %1942 = sst [smem:[#allocation19_spill]] %s1355_s9  ;;  %s2003_s12 = smov (!%p1481_p0, %s37_s12), %s1355_s9 }
  0x1a   : > { %p81_p3 = por %p79_p2, %p1912_p1  ;;  %p1911_p4 = scmp.lt.s32.totalorder %s1359_s10, 8 }
  0x1b   : > { %s259_s15 = sand.u32 1, %s1359_s10   ;;  %s261_s16 = sand.u32 1, %s1327_s26  }
  0x1c   : > { %s1499_s17 = sshll.u32 %s261_s16, 7  ;;  %s822_s18 = sshll.u32 %s1351_s8, 6 }
  0x1d   : > { %s1503_s19 = sadd.s32 %s1355_s9, %s822_s18  ;;  %s263_s20 = scalar_lea.vmem [#allocation7], %s1499_s17 }
  0x1e   : > { %s272_s11 = sshll.u32 %s263_s20, 4  ;;  %s1909_s6 = sshll.u32 %s1503_s19, 7  ;;  %s1507_s11 = int_to_ptr.vmem [resolvable:$true] %s272_s11 }
  0x1f   : > { %s1944_s1 = sld [smem:[#allocation25_spill]]  ;;  %p1518_p5 = pnand %p1911_p4, %p81_p3 }
  0x20   : > { %s1522_s18 = scalar_lea.sflag [#allocation8], %s259_s15 }
  0x21   : > { %s1945_s16 = scalar_select %p1518_p5, 1, 0 }
  0x22   : > { %p1920_p7 = pneg %p1518_p5 }
  0x23   : > { %1946 = sst [smem:[#allocation20_spill]] %s1945_s16 }
  0x25   : > { %s1514_s4 = scalar_lea.hbm %s1944_s1, %s1909_s6  ;;  %s1124_s6 = scalar_lea.hbm %s1944_s1, 16384 }
  0x26   : > { %s1119_s20 = scalar_lea.hbm %s1514_s4, 2048  ;;  %p1125_p10 = scmp.lt.u32.totalorder %s1514_s4, %s1944_s1 }
  0x27   : > { %p1120_p6 = scmp.ne.s32.totalorder %s1514_s4, %s1119_s20  ;;  %p1126_p11 = scmp.lt.u32.totalorder %s1124_s6, %s1119_s20 }
  0x28   : > { %p1128_p13 = scmp.lt.u32.totalorder %s1119_s20, %s1514_s4 }
  0x29   : > { %p1122_p8 = pnand %p1920_p7, %p1120_p6  ;;  %p1127_p12 = por %p1126_p11, %p1125_p10 }
  0x2b   : > { %p1123_p9 = pneg %p1122_p8  ;;  %p1129_p2 = por %p1128_p13, %p1127_p12 }
  0x2d   : > { %p1130_p3 = pnand %p1129_p2, %p1123_p9 }
  0x2f   : > { %1133 = shalt.err (!%p1130_p3)
}
  0x30   : > { %s1134_s15 = scalar_lea.vmem %s1507_s11, 2048  ;;  %s1361_s5 = smov [#allocation7]  }
  0x31   : > { %p1135_p6 = scmp.ne.s32.totalorder %s1507_s11, %s1134_s15  ;;  %s1139_s14 = sshll.u32 %s1361_s5, 4  ;;  %s1140_s14 = int_to_ptr.vmem [resolvable:$false] %s1139_s14 }
  0x32   : > { %s1141_s3 = scalar_lea.vmem %s1140_s14, 4096  ;;  %p1142_p1 = scmp.lt.s32.totalorder %s1507_s11, %s1140_s14 }
  0x33   : > { %p1137_p8 = pnand %p1135_p6, %p1920_p7  ;;  %p1143_p10 = scmp.lt.s32.totalorder %s1141_s3, %s1134_s15 }
  0x35   : > { %p1138_p4 = pneg %p1137_p8  ;;  %p1144_p11 = por %p1143_p10, %p1142_p1 }
  0x37   : > { %p1145_p12 = pnand %p1144_p11, %p1138_p4 }
  0x39   : > { %1148 = shalt.err (!%p1145_p12)
}
  0x3a   : > { %s1916_s6 = smov 512   ;;  %s1917_s7 = smov 128  }
  0x3b   : > { %s1918_s20 = smov 8   ;;  %p39_p1 = scmp.ge.s32.totalorder %s2003_s12, 4 }
  0x3c   : > { %990 = dma.hbm_to_vmem [thread:$0]  (!%p1518_p5), %s1514_s4, 2048, %s1507_s11, %s1522_s18, %s1916_s6, %s1917_s7, %s1918_s20  }
  0x3d   : > { %s1947_s15 = sshll.u32 %s1503_s19, 7  ;;  %s1948_s2 = sld [smem:[#allocation26_spill]] }
  0x3e   : > { %p808_p4 = scmp.ge.s32.totalorder %s1359_s10, 1  ;;  %s286_s1 = scalar_lea.vmem [#allocation9], %s1499_s17 }
  0x3f   : > { %s1563_s30 = sshll.u32 %s286_s1, 4  ;;  %p321_p9 = scmp.lt.s32.totalorder %s1359_s10, 9  ;;  %s1650_s30 = int_to_ptr.vmem [resolvable:$true] %s1563_s30 }
  0x40   : > { %s1571_s4 = sadd.s32 4294967295, %s1359_s10   ;;  %s795_s11 = sadd.s32 4294967294, %s1359_s10  }
  0x41   : > { %p1566_p13 = pnand %p808_p4, %p321_p9  ;;  %s44_s19 = sadd.s32 1, %s1339_s29 }
  0x42   : > { %s2007_s12 = smov (%p39_p1, %s2003_s12), 0  ;;  %p51_p2 = scmp.ne.s32.totalorder %s1339_s29, %s1335_s28 }
  0x43   : > { %s1559_s3 = scalar_lea.hbm %s1948_s2, %s1947_s15  ;;  %s1950_s15 = sadd.s32 1, %s1351_s8 }
  0x44   : > { %s1949_s16 = scalar_select %p1566_p13, 1, 0 }
  0x45   : > { %s2005_s15 = smov (%p1481_p0, %s1950_s15), 0  ;;  %1952 = sst [smem:[#allocation22_spill]] %s2007_s12 }
  0x46   : > { %1951 = sst [smem:[#allocation21_spill]] %s2005_s15  ;;  %s41_s1 = ssub.s32 %s1351_s8, %s2005_s15 }
  0x47   : > { %p42_p3 = scmp.eq.s32.totalorder %s41_s1, 0  ;;  %p57_p6 = scmp.ne.s32.totalorder %s1335_s28, %s1331_s27 }
  0x48   : > { %p1953_p8 = scmp.eq.s32.totalorder %s1359_s10, 0  ;;  %p58_p10 = scmp.eq.s32.totalorder %s1571_s4, 0 }
  0x49   : > { %s1598_s17 = scalar_select %p42_p3, %s1339_s29, %s44_s19  }
  0x4a   : > { %p1592_p0 = por %p1953_p8, %p51_p2  ;;  %p1600_p11 = por %p58_p10, %p57_p6 }
  0x4b   : > { %1955 = sst [smem:[#allocation23_spill]] %s1598_s17  ;;  %s68_s14 = ssub.s32 %s1355_s9, %s2007_s12 }
  0x4c   : > { %s1956_s5 = scalar_select %p1600_p11, 1, 0 }
  0x4d   : > { %s69_s6 = sor.u32 %s68_s14, %s41_s1  ;;  %p85_p12 = scmp.ne.s32.totalorder %s1323_s25, %s1319_s24 }
  0x4e   : > { %p70_p1 = scmp.eq.s32.totalorder %s69_s6, 0  ;;  %p202_p4 = scmp.eq.s32.totalorder %s68_s14, 0 }
  0x4f   : > { %p1608_p9 = por %p85_p12, %p58_p10  ;;  %s204_s7 = sadd.s32 1, %s1315_s23 }
  0x50   : > { %s1958_s19 = sadd.s32 1, %s1327_s26  ;;  %p214_p2 = scmp.ne.s32.totalorder %s1315_s23, %s1311_s22 }
  0x51   : > { %s1957_s27 = scalar_select %p1608_p9, 1, 0 }
  0x52   : > { %s1616_s20 = scalar_select %p70_p1, %s1327_s26, %s1958_s19  }
  0x53   : > { %s1619_s15 = scalar_select %p202_p4, %s1315_s23, %s204_s7  }
  0x54   : > { %p215_p3 = scmp.eq.s32.totalorder %s1571_s4, 7  ;;  %p220_p6 = scmp.ne.s32.totalorder %s1311_s22, %s1307_s21 }
  0x55   : > { %p221_p8 = scmp.eq.s32.totalorder %s795_s11, 7  ;;  %s241_s6 = sand.u32 1, %s1339_s29  }
  0x56   : > { %p1626_p7 = por %p215_p3, %p214_p2  ;;  %s798_s14 = sshll.u32 %s241_s6, 3 }
  0x57   : > { %p1631_p10 = por %p221_p8, %p220_p6  ;;  %s799_s12 = sshll.u32 %s1351_s8, 7 }
  0x58   : > { %s1959_s24 = scalar_select %p1626_p7, 1, 0 }
  0x59   : > { %s1960_s1 = scalar_select %p1631_p10, 1, 0 }
  0x5a   : > { %s1961_s0 = sld [smem:[#allocation24_spill]]  ;;  %s245_s11 = scalar_lea.vmem [#allocation4], %s798_s14 }
  0x5b   : > { %s252_s17 = sshll.u32 %s245_s11, 4  ;;  %p1962_p12 = scmp.lt.s32.totalorder %s1359_s10, 8  ;;  %s1652_s17 = int_to_ptr.vmem [resolvable:$true] %s252_s17 }
  0x5c   : > { %s242_s9 = scalar_lea.sflag [#allocation5], %s241_s6 }
  0x5d   : > { %p1645_p1 = pnand %p1962_p12, %p1592_p0 }
  0x5f   : > { %p1151_p2 = pneg %p1645_p1 }
  0x60   : > { %s1639_s7 = scalar_lea.hbm %s1961_s0, %s799_s12  ;;  %s1154_s19 = scalar_lea.hbm %s1961_s0, 256 }
  0x61   : > { %s1149_s12 = scalar_lea.hbm %s1639_s7, 128  ;;  %p1155_p0 = scmp.lt.u32.totalorder %s1639_s7, %s1961_s0 }
  0x62   : > { %p1150_p4 = scmp.ne.s32.totalorder %s1639_s7, %s1149_s12  ;;  %p1156_p8 = scmp.lt.u32.totalorder %s1154_s19, %s1149_s12 }
  0x63   : > { %p1158_p10 = scmp.lt.u32.totalorder %s1149_s12, %s1639_s7 }
  0x64   : > { %p1152_p3 = pnand %p1151_p2, %p1150_p4  ;;  %p1157_p12 = por %p1156_p8, %p1155_p0 }
  0x66   : > { %p1153_p6 = pneg %p1152_p3  ;;  %p1159_p7 = por %p1158_p10, %p1157_p12 }
  0x68   : > { %p1160_p9 = pnand %p1159_p7, %p1153_p6 }
  0x6a   : > { %1163 = shalt.err (!%p1160_p9)
}
  0x6b   : > { %s1164_s6 = scalar_lea.vmem %s1652_s17, 128  ;;  %s1365_s13 = smov [#allocation4]  }
  0x6c   : > { %p1165_p4 = scmp.ne.s32.totalorder %s1652_s17, %s1164_s6  ;;  %s1169_s14 = sshll.u32 %s1365_s13, 4  ;;  %s1170_s14 = int_to_ptr.vmem [resolvable:$false] %s1169_s14 }
  0x6d   : > { %s1171_s8 = scalar_lea.vmem %s1170_s14, 256  ;;  %p1172_p13 = scmp.lt.s32.totalorder %s1652_s17, %s1170_s14 }
  0x6e   : > { %p1167_p3 = pnand %p1165_p4, %p1151_p2  ;;  %p1173_p0 = scmp.lt.s32.totalorder %s1171_s8, %s1164_s6 }
  0x70   : > { %p1168_p11 = pneg %p1167_p3  ;;  %p1174_p8 = por %p1173_p0, %p1172_p13 }
  0x72   : > { %p1175_p10 = pnand %p1174_p8, %p1168_p11 }
  0x74   : > { %1178 = shalt.err (!%p1175_p10)
}
  0x75   : > { %987 = dma.hbm_to_vmem [thread:$0]  (!%p1645_p1), %s1639_s7, 128, %s1652_s17, %s242_s9  }
  0x76   : > { %s1179_s19 = scalar_lea.hbm %s1559_s3, 2048  ;;  %p1965_p9 = pneg %p1518_p5 }
  0x77   : > { %p1180_p7 = scmp.ne.s32.totalorder %s1559_s3, %s1179_s19  ;;  %s1184_s13 = scalar_lea.hbm %s1948_s2, 16384 }
  0x78   : > { %p1185_p13 = scmp.lt.u32.totalorder %s1559_s3, %s1948_s2  ;;  %p1186_p11 = scmp.lt.u32.totalorder %s1184_s13, %s1179_s19 }
  0x79   : > { %p1182_p2 = pnand %p1180_p7, %p1965_p9  ;;  %p1188_p4 = scmp.lt.u32.totalorder %s1179_s19, %s1559_s3 }
  0x7a   : > { %p1187_p12 = por %p1186_p11, %p1185_p13 }
  0x7b   : > { %p1183_p6 = pneg %p1182_p2 }
  0x7c   : > { %p1189_p3 = por %p1188_p4, %p1187_p12 }
  0x7e   : > { %p1190_p0 = pnand %p1189_p3, %p1183_p6 }
  0x80   : > { %1193 = shalt.err (!%p1190_p0)
}
  0x81   : > { %s1194_s17 = scalar_lea.vmem %s1650_s30, 2048  ;;  %p1966_p8 = pmov %p1965_p9 }
  0x82   : > { %p1195_p1 = scmp.ne.s32.totalorder %s1650_s30, %s1194_s17  ;;  %s1366_s7 = smov [#allocation9]  }
  0x83   : > { %s1199_s9 = sshll.u32 %s1366_s7, 4  ;;  %s1200_s9 = int_to_ptr.vmem [resolvable:$false] %s1199_s9 }
  0x84   : > { %p1197_p10 = pnand %p1195_p1, %p1966_p8  ;;  %s1201_s8 = scalar_lea.vmem %s1200_s9, 4096 }
  0x85   : > { %p1202_p9 = scmp.lt.s32.totalorder %s1650_s30, %s1200_s9  ;;  %p1203_p2 = scmp.lt.s32.totalorder %s1201_s8, %s1194_s17 }
  0x86   : > { %p1198_p7 = pneg %p1197_p10 }
  0x87   : > { %p1204_p13 = por %p1203_p2, %p1202_p9 }
  0x89   : > { %p1205_p11 = pnand %p1204_p13, %p1198_p7 }
  0x8b   : > { %1208 = shalt.err (!%p1205_p11)
}
  0x8c   : > { %s1967_s19 = smov 8   ;;  %s1968_s11 = smov 128  }
  0x8d   : > { %s1969_s6 = smov 512   ;;  %p1970_p6 = scmp.ne.s32.totalorder %s1949_s16, 0 }
  0x8e   : > { %993 = dma.hbm_to_vmem [thread:$0]  (!%p1518_p5), %s1559_s3, 2048, %s1650_s30, %s1522_s18, %s1969_s6, %s1968_s11, %s1967_s19  }
  0x8f   : > { %325 = sbr.rel (%p1970_p6) target bundleno = 463 (0x1cf), region = 44  ;;  %s327_s13 = sand.u32 (!%p1970_p6), 1, %s1335_s28  }
  0x90   : > { %s1709_s14 = sshll.u32 (!%p1970_p6), %s327_s13, 3  ;;  %s328_s29 = scalar_lea.sflag (!%p1970_p6), [#allocation5], %s327_s13 }
  0x91   : > { %p1971_p12 = scmp.ne.s32.totalorder (!%p1970_p6), %s1956_s5, 0 }
  0x96   : > { %1294 = dma.done.wait (%p1971_p12), %s328_s29, 128  }
  0x97   : > { %1296 = vsyncadd (%p1971_p12), %s328_s29, 4294967168  ;;  %s336_s30 = sand.u32 1, %s1571_s4   ;;  %s338_s18 = sand.u32 1, %s1323_s25  }
  0x98   : > { %s810_s16 = sshll.u32 %s338_s18, 7  ;;  %s337_s3 = scalar_lea.sflag [#allocation8], %s336_s30 }
  0x99   : > { %s1718_s12 = scalar_lea.vmem [#allocation7], %s810_s16  ;;  %p1972_p5 = scmp.ne.s32.totalorder %s1957_s27, 0 }
  0x9b   : > { %1298 = dma.done.wait (%p1972_p5), %s337_s3, 4096  }
  0x9c   : > { %1300 = vsyncadd (%p1972_p5), %s337_s3, 4294963200  ;;  %s1973_s7 = sld [smem:[#allocation16_spill]]  ;;  %s1974_s9 = sld [smem:[#allocation17_spill]] }
  0x9d   : > { %s1928_s5 = sand.u32 1, %s1311_s22   ;;  %s1975_s11 = sld [smem:[#allocation27_spill]] }
  0x9e   : > { %s1727_s8 = sshll.u32 %s1928_s5, 3  ;;  %s1976_s30 = sld [smem:[#allocation28_spill]] }
  0x9f   : > { %s1977_s17 = sld [smem:[#allocation29_spill]]  ;;  %s1749_s2 = scalar_lea.vmem [#allocation9], %s810_s16 }
  0xa0   : > { %s396_s28 = scalar_lea.vmem [#allocation10], %s1727_s8 }
  0xa2   : > { %p399_p4 = scmp.lt.s32.totalorder %s1973_s7, 1  ;;  %p402_p3 = scmp.lt.s32.totalorder %s1974_s9, 3 }
  0xa3   : > { %p813_p0 = scmp.ne.s32.totalorder %s1973_s7, 0 }
  0xa4   : > { %s1732_s4 = scalar_select %p399_p4, %s1973_s7, 1 }
  0xa5   : > { %s2009_s9 = smov (!%p402_p3, %s1974_s9), 3  ;;  %411 = sbr.rel (%p813_p0) target bundleno = 172 (0xac), region = 60 }
  0xa6   : > { %s401_s6 = scalar_lea.vmem %s1975_s11, %s1732_s4  ;;  %s404_s18 = scalar_lea.vmem %s1976_s30, %s2009_s9  ;;  %v1367_v0 = vmov (!%p813_p0), 0.0  }
  0xa7   : > { %s407_s0 = scalar_lea.vmem %s1977_s17, %s2009_s9  ;;  %412 = vst [vmem:[#allocation2] sm:$0xff] (!%p813_p0), %v1367_v0  ;;  %413 = vst [vmem:[#allocation3] sm:$0xff] (!%p813_p0), %v1367_v0 }
  0xac PF: > { %v416_v1 = vld [vmem:[%s1718_s12] sm:$0xff]  ;;  %v417_v2 = vld [vmem:[%s1718_s12 + $0x8] sm:$0xff]  ;;  %v1368_v4 = vmov 0.0|0.0   ;;  %v418_v7 = vld [vmem:[%s1718_s12 + $0x10] sm:$0xff]  ;;  %vm1369_vm0 = vmmov 0   ;;  %v1370_v12 = vmov 0.0  }
  0xad   : > { %v513_v3 = vld [vmem:[%s1749_s2] sm:$0xff]  ;;  %928 = vmatprep.subr.bf16.mxu0 %v1368_v4  ;;  %952 = vmatprep.subr.bf16.mxu1 %v1368_v4  ;;  %v929_v5 = vpack.c.bf16 %v417_v2, %v416_v1  ;;  %v514_v6 = vld [vmem:[%s1749_s2 + $0x8] sm:$0xff]  ;;  %v419_v8 = vld [vmem:[%s1718_s12 + $0x18] sm:$0xff]  ;;  %s1978_s17 = scalar_lea.vmem [#allocation4], %s1709_s14 }
  0xae   : > { %v953_v9 = vpack.c.bf16 %v514_v6, %v513_v3  ;;  %v515_v10 = vld [vmem:[%s1749_s2 + $0x10] sm:$0xff]  ;;  %v516_v11 = vld [vmem:[%s1749_s2 + $0x18] sm:$0xff]  ;;  %890 = vmatprep.mubr.msk.f32.mxu0 %vm1369_vm0, %v1370_v12  ;;  %925 = vmatprep.mubr.msk.f32.mxu1 %vm1369_vm0, %v1370_v12  ;;  %v932_v13 = vpack.c.bf16 %v419_v8, %v418_v7  ;;  %v420_v15 = vld [vmem:[%s1718_s12 + $0x20] sm:$0xff] }
  0xaf   : > { %930 = vmatpush3.bf16.msra.mxu0 %v929_v5  ;;  %v956_v14 = vpack.c.bf16 %v516_v11, %v515_v10  ;;  %v421_v16 = vld [vmem:[%s1718_s12 + $0x28] sm:$0xff]  ;;  %v517_v17 = vld [vmem:[%s1749_s2 + $0x20] sm:$0xff]  ;;  %v422_v21 = vld [vmem:[%s1718_s12 + $0x30] sm:$0xff] }
  0xb0   : > { %954 = vmatpush3.bf16.msra.mxu1 %v953_v9  ;;  %931 = vmatprep.subr.bf16.mxu0 %v1368_v4  ;;  %v518_v18 = vld [vmem:[%s1749_s2 + $0x28] sm:$0xff]  ;;  %v935_v19 = vpack.c.bf16 %v421_v16, %v420_v15  ;;  %v423_v22 = vld [vmem:[%s1718_s12 + $0x38] sm:$0xff]  ;;  %v519_v23 = vld [vmem:[%s1749_s2 + $0x30] sm:$0xff] }
  0xb1   : > { %955 = vmatprep.subr.bf16.mxu1 %v1368_v4  ;;  %v959_v20 = vpack.c.bf16 %v518_v18, %v517_v17  ;;  %v520_v24 = vld [vmem:[%s1749_s2 + $0x38] sm:$0xff]  ;;  %v938_v25 = vpack.c.bf16 %v423_v22, %v422_v21  ;;  %v424_v27 = vld [vmem:[%s1718_s12 + $0x40] sm:$0xff]  ;;  %v425_v28 = vld [vmem:[%s1718_s12 + $0x48] sm:$0xff] }
  0xb2   : > { %v962_v26 = vpack.c.bf16 %v520_v24, %v519_v23  ;;  %v521_v29 = vld [vmem:[%s1749_s2 + $0x40] sm:$0xff]  ;;  %v522_v30 = vld [vmem:[%s1749_s2 + $0x48] sm:$0xff]  ;;  %v941_v31 = vpack.c.bf16 %v425_v28, %v424_v27  ;;  %v426_v33 = vld [vmem:[%s1718_s12 + $0x50] sm:$0xff] }
  0xb3   : > { %933 = vmatpush3.bf16.msra.mxu0 %v932_v13  ;;  %v965_v32 = vpack.c.bf16 %v522_v30, %v521_v29  ;;  %v427_v34 = vld [vmem:[%s1718_s12 + $0x58] sm:$0xff]  ;;  %v523_v35 = vld [vmem:[%s1749_s2 + $0x50] sm:$0xff]  ;;  %v428_v39 = vld [vmem:[%s1718_s12 + $0x60] sm:$0xff] }
  0xb4   : > { %957 = vmatpush3.bf16.msra.mxu1 %v956_v14  ;;  %934 = vmatprep.subr.bf16.mxu0 %v1368_v4  ;;  %v524_v36 = vld [vmem:[%s1749_s2 + $0x58] sm:$0xff]  ;;  %v944_v37 = vpack.c.bf16 %v427_v34, %v426_v33  ;;  %v429_v40 = vld [vmem:[%s1718_s12 + $0x68] sm:$0xff]  ;;  %v525_v41 = vld [vmem:[%s1749_s2 + $0x60] sm:$0xff] }
  0xb5   : > { %958 = vmatprep.subr.bf16.mxu1 %v1368_v4  ;;  %v968_v38 = vpack.c.bf16 %v524_v36, %v523_v35  ;;  %v526_v42 = vld [vmem:[%s1749_s2 + $0x68] sm:$0xff]  ;;  %v947_v43 = vpack.c.bf16 %v429_v40, %v428_v39  ;;  %v430_v45 = vld [vmem:[%s1718_s12 + $0x70] sm:$0xff]  ;;  %v431_v46 = vld [vmem:[%s1718_s12 + $0x78] sm:$0xff] }
  0xb6   : > { %v971_v44 = vpack.c.bf16 %v526_v42, %v525_v41  ;;  %v527_v47 = vld [vmem:[%s1749_s2 + $0x70] sm:$0xff]  ;;  %v528_v48 = vld [vmem:[%s1749_s2 + $0x78] sm:$0xff]  ;;  %v950_v49 = vpack.c.bf16 %v431_v46, %v430_v45  ;;  %v814_v52 = vld [vmem:[%s401_s6] ss:$0 sm:$0xff]  ;;  %s1980_s2 = sld [smem:[#allocation16_spill]] }
  0xb7   : > { %936 = vmatpush3.bf16.msra.mxu0 %v935_v19  ;;  %v974_v50 = vpack.c.bf16 %v528_v48, %v527_v47  ;;  %v414_v51 = vld [vmem:[%s1978_s17] sm:$0xff]  ;;  %v415_v54 = vld [vmem:[#allocation2] sm:$0xff]  ;;  %v504_v55 = vld [vmem:[#allocation3] sm:$0xff] }
  0xb8   : > { %960 = vmatpush3.bf16.msra.mxu1 %v959_v20  ;;  %937 = vmatprep.subr.bf16.mxu0 %v1368_v4  ;;  %v512_v53 = vmul.f32 %v814_v52, %v414_v51 }
  0xb9   : > { %961 = vmatprep.subr.bf16.mxu1 %v1368_v4 }
  0xbb   : > { %939 = vmatpush3.bf16.msra.mxu0 %v938_v25 }
  0xbc   : > { %963 = vmatpush3.bf16.msra.mxu1 %v962_v26  ;;  %940 = vmatprep.subr.bf16.mxu0 %v1368_v4  ;;  %p815_p1 = scmp.ne.s32.totalorder %s1980_s2, 1 }
  0xbd   : > { %964 = vmatprep.subr.bf16.mxu1 %v1368_v4  ;;  %v816_v63 = vld [vmem:[%s404_s18] ss:$0 sm:$0xff] (!%p815_p1) }
  0xbe   : > { %v817_v2 = vld [vmem:[%s407_s0] ss:$0 sm:$0xff] (!%p815_p1) }
  0xbf   : > { %942 = vmatpush3.bf16.msra.mxu0 %v941_v31 }
  0xc0   : > { %966 = vmatpush3.bf16.msra.mxu1 %v965_v32  ;;  %943 = vmatprep.subr.bf16.mxu0 %v1368_v4 }
  0xc1   : > { %967 = vmatprep.subr.bf16.mxu1 %v1368_v4 }
  0xc3   : > { %945 = vmatpush3.bf16.msra.mxu0 %v944_v37 }
  0xc4   : > { %969 = vmatpush3.bf16.msra.mxu1 %v968_v38  ;;  %946 = vmatprep.subr.bf16.mxu0 %v1368_v4 }
  0xc5   : > { %970 = vmatprep.subr.bf16.mxu1 %v1368_v4 }
  0xc7   : > { %948 = vmatpush3.bf16.msra.mxu0 %v947_v43 }
  0xc8   : > { %972 = vmatpush3.bf16.msra.mxu1 %v971_v44  ;;  %949 = vmatprep.subr.bf16.mxu0 %v1368_v4 }
  0xc9   : > { %973 = vmatprep.subr.bf16.mxu1 %v1368_v4 }
  0xcb   : > { %951 = vmatpush3.bf16.msra.mxu0 %v950_v49 }
  0xcc   : > { %975 = vmatpush3.bf16.msra.mxu1 %v974_v50 }
  0xce   : > { %891 = vmatmul.mubr.f32.vlgmr.msra.gmra.mrb[0].mxu0 %v414_v51 }
  0xcf   : > { %926 = vmatmul.mubr.f32.vlgmr.msra.gmra.mrb[0].mxu1 %v512_v53 }
 0x19f   : > { %604 = sbr.rel (%p815_p1) target bundleno = 436 (0x1b4), region = 64 }
 0x1a1   : > { %v498_v56 = vpop.f32.mrb[0].mxu0 }
 0x1a2   : > { %v502_v57 = vadd.f32 %v498_v56, %v415_v54  ;;  %v595_v58 = vpop.f32.mrb[0].mxu1  ;;  %v892_v59 = vpop.f32.mrb[1].mxu0 }
 0x1a3   : > { %v599_v60 = vadd.f32 %v595_v58, %v504_v55  ;;  %v927_v61 = vpop.f32.mrb[1].mxu1 }
 0x1a4   : > { %503 = vst [vmem:[#allocation2] sm:$0xff] %v502_v57 }
 0x1a5   : > { %600 = vst [vmem:[#allocation3] sm:$0xff] %v599_v60 }
 0x1ab   : > { %v605_v62 = vld [vmem:[#allocation2] sm:$0xff] }
 0x1ac   : > { %v607_v0 = vld [vmem:[#allocation3] sm:$0xff] }
 0x1ad   : > { %v614_v1 = vmul.f32 %v816_v63, %v607_v0 }
 0x1af   : > { %v615_v3 = vadd.f32 %v614_v1, %v605_v62 }
 0x1b1   : > { %v623_v4 = vadd.f32 %v817_v2, %v615_v3 }
 0x1b3   : > { %624 = vst [vmem:[%s396_s28] sm:$0xff] %v623_v4 }
 0x1b4 PF: > { %s1983_s6 = sld [smem:[#allocation17_spill]]  ;;  %s1984_s18 = sld [smem:[#allocation30_spill]] }
 0x1b5   : > { %s639_s17 = sshll.u32 %s396_s28, 4  ;;  %s1985_s9 = sand.u32 1, %s1311_s22   ;;  %s640_s17 = int_to_ptr.vmem [resolvable:$true] %s639_s17 }
 0x1b6   : > { %s626_s0 = scalar_lea.sflag [#allocation6], %s1985_s9  ;;  %s1209_s16 = scalar_lea.vmem %s640_s17, 128 }
 0x1b7   : > { %p1210_p8 = scmp.ne.s32.totalorder %s640_s17, %s1209_s16  ;;  %p1986_p10 = scmp.ne.s32.totalorder %s1959_s24, 0 }
 0x1b8   : > { %s1371_s7 = smov [#allocation10]  }
 0x1b9   : > { %p1211_p7 = pnand %p1210_p8, %p1986_p10  ;;  %s1213_s5 = sshll.u32 %s1371_s7, 4  ;;  %s1214_s5 = int_to_ptr.vmem [resolvable:$false] %s1213_s5 }
 0x1ba   : > { %s819_s13 = sshll.u32 %s1983_s6, 7  ;;  %s1215_s2 = scalar_lea.vmem %s1214_s5, 256 }
 0x1bb   : > { %s1825_s3 = scalar_lea.hbm %s1984_s18, %s819_s13  ;;  %p1212_p9 = pneg %p1211_p7 }
 0x1bc   : > { %p1216_p2 = scmp.lt.s32.totalorder %s640_s17, %s1214_s5  ;;  %p1217_p13 = scmp.lt.s32.totalorder %s1215_s2, %s1209_s16 }
 0x1be   : > { %p1218_p11 = por %p1217_p13, %p1216_p2 }
 0x1c0   : > { %p1219_p6 = pnand %p1218_p11, %p1212_p9 }
 0x1c2   : > { %1222 = shalt.err (!%p1219_p6)
}
 0x1c3   : > { %s1223_s28 = scalar_lea.hbm %s1825_s3, 128  ;;  %s1227_s12 = scalar_lea.hbm %s1984_s18, 512 }
 0x1c4   : > { %p1224_p12 = scmp.ne.s32.totalorder %s1825_s3, %s1223_s28  ;;  %p1228_p3 = scmp.lt.u32.totalorder %s1825_s3, %s1984_s18 }
 0x1c5   : > { %p1229_p0 = scmp.lt.u32.totalorder %s1227_s12, %s1223_s28  ;;  %p1231_p8 = scmp.lt.u32.totalorder %s1223_s28, %s1825_s3 }
 0x1c6   : > { %p1225_p5 = pnand %p1224_p12, %p1986_p10 }
 0x1c7   : > { %p1230_p1 = por %p1229_p0, %p1228_p3 }
 0x1c8   : > { %p1226_p4 = pneg %p1225_p5 }
 0x1c9   : > { %p1232_p7 = por %p1231_p8, %p1230_p1 }
 0x1cb   : > { %p1233_p9 = pnand %p1232_p7, %p1226_p4 }
 0x1cd   : > { %1236 = shalt.err (!%p1233_p9)
}
 0x1ce   : > { %982 = dma.vmem_to_hbm [thread:$0]  (%p1986_p10), %s640_s17, 128, %s1825_s3, %s626_s0  }
 0x1cf PF: > { %p999_p2 = scmp.ge.s32.totalorder %s1359_s10, 2  ;;  %s651_s19 = sand.u32 1, %s1307_s21  }
 0x1d0   : > { %p1987_p13 = scmp.ne.s32.totalorder %s1960_s1, 0  ;;  %s652_s11 = scalar_lea.sflag [#allocation6], %s651_s19 }
 0x1d2   : > { %p995_p11 = pnand %p999_p2, %p1987_p13 }
 0x1d4   : > { %1302 = dma.done.wait (!%p995_p11), %s652_s11, 128  }
 0x1d5   : > { %1304 = vsyncadd (!%p995_p11), %s652_s11, 4294967168  ;;  %s25_s10 = sadd.s32 1, %s1359_s10   ;;  %s1989_s27 = sld [smem:[#allocation14_spill]] }
 0x1d6   : > { %p1853_p6 = scmp.ge.s32.totalorder %s25_s10, 10   ;;  %s1990_s28 = sld [smem:[#allocation15_spill]] }
 0x1d7   : > { %s1991_s29 = sld [smem:[#allocation23_spill]]  ;;  %s1992_s30 = sld [smem:[#allocation18_spill]] }
 0x1d8   : > { %s1993_s7 = sld [smem:[#allocation19_spill]]  ;;  %s1994_s8 = sld [smem:[#allocation21_spill]] }
 0x1d9   : > { %s1995_s9 = sld [smem:[#allocation22_spill]]  ;;  %s1996_s21 = smov %s1311_s22 }
 0x1da   : > { %s1997_s22 = smov %s1315_s23  ;;  %s1998_s23 = smov %s1619_s15 }
 0x1db   : > { %s1999_s24 = smov %s1323_s25  ;;  %s2000_s25 = smov %s1327_s26 }
 0x1dc   : > { %s2001_s26 = smov %s1616_s20  ;;  %24 = sbr.rel (!%p1853_p6) target bundleno = 20 (0x14), region = 130 }
 0x1e3   :  { %657 = vsyncpa [#allocation5], 1 }
 0x1e4   :  { %659 = vsyncpa [#allocation5 + $0x1], 1 }
 0x1e5   :  { %660 = vsyncpa [#allocation8], 1 }
 0x1e6   :  { %662 = vsyncpa [#allocation8 + $0x1], 1 }
 0x1e7   :  { %663 = vsyncpa [#allocation6], 1 }
 0x1e8   :  { %665 = vsyncpa [#allocation6 + $0x1], 1 }

</bundles_post_ra>
